<compile_context>
chip_gen: v5e
topology: v5e:2x2
jax: 0.10.0
libtpu: 0.0.40
codegen_flags: <defaults>
</compile_context>

<pallas_src>
import functools

import jax
import jax.numpy as jnp
from jax import lax
from jax.experimental import pallas as pl
from jax.experimental.pallas import tpu as pltpu


def _round_up(x, m):
    return (x + m - 1) // m * m


def _vmem_capacity_bytes():
    try:
        cap = int(pltpu.get_tpu_info().vmem_capacity_bytes)
        if cap > 0:
            return cap
    except Exception:
        pass
    return 64 * 1024 * 1024  # conservative (v7x-sized) default


# -----------------------------------------------------------------------------
# Path 1: scalar-prefetch + manual-DMA row gather (HW >> M).
# -----------------------------------------------------------------------------
def _dma_gather_loss_kernel(ind_ref,       # SMEM  (B, M) int32 (scalar prefetch)
                            feat_hbm,      # HBM   (B*HW, C) f32, memory_space=ANY
                            mask_ref,      # VMEM  (1, M, 1) f32
                            tgt_ref,       # VMEM  (1, M, C) f32
                            out_ref,       # VMEM  (1, 1, C) f32  per-batch partial sum
                            pred_vmem,     # VMEM  (M, C) f32 scratch
                            sem,           # DMA semaphore
                            *, sigma, hw):
    b = pl.program_id(0)
    n_obj = pred_vmem.shape[0]

    # Issue all row-gather DMAs up front (independent destination rows, one
    # shared semaphore), then drain.  Each copy is one contiguous (1, C) row.
    # TODO(synk): bound in-flight descriptors with a sliding window if M grows
    #             into the thousands.
    @pl.loop(0, n_obj)
    def _issue(m):
        row = b * hw + ind_ref[b, m]
        pltpu.make_async_copy(
            feat_hbm.at[pl.ds(row, 1), :],
            pred_vmem.at[pl.ds(m, 1), :],
            sem,
        ).start()

    @pl.loop(0, n_obj)
    def _drain(m):
        row = b * hw + ind_ref[b, m]
        pltpu.make_async_copy(
            feat_hbm.at[pl.ds(row, 1), :],
            pred_vmem.at[pl.ds(m, 1), :],
            sem,
        ).wait()

    pred = pred_vmem[...]                    # (M, C)
    tgt = tgt_ref[0]                         # (M, C)
    msk = mask_ref[0]                        # (M, 1)

    isnotnan = jnp.logical_not(jnp.isnan(tgt)).astype(jnp.float32)
    m_full = msk * isnotnan                  # (M, C)

    regr = pred * m_full
    gt_regr = tgt * m_full                   # NaN * 0 stays NaN -- matches torch exactly

    abs_diff = jnp.abs(regr - gt_regr)
    thr = 1.0 / (sigma * sigma)
    loss = jnp.where(abs_diff <= thr,
                     0.5 * (sigma * sigma) * abs_diff * abs_diff,
                     abs_diff - 0.5 * thr)

    out_ref[0] = jnp.sum(loss, axis=0, keepdims=True)   # (1, C) partial sum for batch b


def _smooth_reg_loss_dma(output, mask, ind, target, *, sigma):
    B, C, H, W = output.shape
    M = ind.shape[1]
    HW = H * W

    # (B*HW, C): every gathered row is one contiguous C-vector (same copy the
    # torch `_transpose_and_gather_feat` does with .permute().contiguous()).
    feat_rows = (output.astype(jnp.float32)
                 .transpose(0, 2, 3, 1)
                 .reshape(B * HW, C))

    mask_f = mask.astype(jnp.float32)
    mask_r = mask_f.reshape(B, M, 1)
    tgt = target.astype(jnp.float32)                     # (B, M, C)
    ind_i = ind.astype(jnp.int32)                        # (B, M) -> SMEM

    kernel = functools.partial(_dma_gather_loss_kernel, sigma=float(sigma), hw=HW)

    partial_sums = pl.pallas_call(
        kernel,
        out_shape=jax.ShapeDtypeStruct((B, 1, C), jnp.float32),
        grid_spec=pltpu.PrefetchScalarGridSpec(
            num_scalar_prefetch=1,                       # ind -> SMEM
            grid=(B,),
            in_specs=[
                pl.BlockSpec(memory_space=pl.ANY),                        # feat stays in HBM
                pl.BlockSpec((1, M, 1), lambda b, ind_ref: (b, 0, 0)),    # mask
                pl.BlockSpec((1, M, C), lambda b, ind_ref: (b, 0, 0)),    # target
            ],
            out_specs=pl.BlockSpec((1, 1, C), lambda b, ind_ref: (b, 0, 0)),
            scratch_shapes=[
                pltpu.VMEM((M, C), jnp.float32),          # gathered pred rows
                pltpu.SemaphoreType.DMA(()),
            ],
        ),
        compiler_params=pltpu.CompilerParams(
            dimension_semantics=("parallel",),            # B shards across v7x's 2 TCs
        ),
    )(ind_i, feat_rows, mask_r, tgt)

    # Tiny epilogue: combine per-batch partials and normalize.
    num = jnp.sum(mask_f)
    return jnp.sum(partial_sums[:, 0, :], axis=0) / (num + 0.0001)


# -----------------------------------------------------------------------------
# Path 2: one-hot MXU gather fallback (small feature maps).
# -----------------------------------------------------------------------------
def _matmul_gather_loss_kernel(feat_ref, mask_ref, ind_ref, tgt_ref, out_ref,
                               acc_ref, *, sigma, tk):
    k = pl.program_id(0)
    n_k = pl.num_programs(0)

    @pl.when(k == 0)
    def _():
        acc_ref[...] = jnp.zeros_like(acc_ref)

    feat = feat_ref[...]                       # (B, C, tk)     f32
    ind = ind_ref[...]                         # (B, M_pad, 1)  int32 (pre-shaped in wrapper)

    # One-hot over this HW tile only; bf16 keeps 0/1 exact at half the VMEM.
    base = k * tk
    local = lax.broadcasted_iota(jnp.int32, (1, 1, tk), 2) + base     # (1, 1, tk)
    onehot = (ind == local).astype(jnp.bfloat16)                      # (B, M_pad, tk)

    # Exact 3-way bf16 split of feat: three DEFAULT-precision bf16 MXU passes
    # instead of ~6 f32 HIGHEST passes, while the gathered pred stays f32-exact.
    hi = feat.astype(jnp.bfloat16)
    r1 = feat - hi.astype(jnp.float32)
    mid = r1.astype(jnp.bfloat16)
    lo = (r1 - mid.astype(jnp.float32)).astype(jnp.bfloat16)

    def _gather(x):
        return jnp.einsum("bch,bmh->bcm", x, onehot,
                          preferred_element_type=jnp.float32)

    acc_ref[...] += _gather(hi) + _gather(mid) + _gather(lo)          # (B, C, M_pad)

    @pl.when(k == n_k - 1)
    def _():
        pred = acc_ref[...]                    # (B, C, M_pad)
        tgt = tgt_ref[...]                     # (B, C, M_pad)
        mask = mask_ref[...]                   # (B, M_pad)

        num = jnp.sum(mask)

        isnotnan = jnp.logical_not(jnp.isnan(tgt)).astype(jnp.float32)
        m = mask[:, None, :] * isnotnan        # (B, C, M_pad)

        regr = pred * m
        gt_regr = tgt * m                      # NaN * 0 stays NaN -- matches torch exactly

        abs_diff = jnp.abs(regr - gt_regr)
        thr = 1.0 / (sigma * sigma)
        loss = jnp.where(abs_diff <= thr,
                         0.5 * (sigma * sigma) * abs_diff * abs_diff,
                         abs_diff - 0.5 * thr)

        per_c = jnp.sum(jnp.sum(loss, axis=-1), axis=0, keepdims=True)   # (1, C)
        out_ref[...] = per_c / (num + 0.0001)


def _pick_tk(HW, B, M_pad, requested, vmem_cap):
    """Generation-aware HW tile: big enough to amortize per-step overhead,
    bounded by the bf16 one-hot VMEM budget, and (when possible) dividing HW
    so the feature map needs no host-side pad/copy."""
    onehot_budget = min(16 * 1024 * 1024, vmem_cap // 8)       # bytes of bf16 (B, M_pad, tk)
    cap = max(128, (onehot_budget // (2 * B * M_pad)) // 128 * 128)
    if requested is not None:
        cap = min(cap, max(128, (int(requested) // 128) * 128))
    cap = min(cap, _round_up(HW, 128))

    best_div = 0
    d = 128
    while d <= cap:
        if HW % d == 0:
            best_div = d
        d += 128
    return best_div if best_div > 0 else cap


def _smooth_reg_loss_matmul(output, mask, ind, target, *, sigma, tk=None):
    B, C, H, W = output.shape
    M = ind.shape[1]
    HW = H * W

    M_pad = _round_up(max(M, 1), 128)
    vmem_cap = _vmem_capacity_bytes()
    tk_sel = _pick_tk(HW, B, M_pad, tk, vmem_cap)
    HW_pad = _round_up(HW, tk_sel)
    num_k = HW_pad // tk_sel

    feat = output.reshape(B, C, HW).astype(jnp.float32)
    if HW_pad != HW:
        # TODO(synk): mask the tail tile in-kernel instead of materializing a
        #             padded copy of the whole feature map.
        feat = jnp.pad(feat, ((0, 0), (0, 0), (0, HW_pad - HW)))

    mask_f = mask.astype(jnp.float32)
    ind_i = ind.astype(jnp.int32)
    tgt_t = jnp.transpose(target.astype(jnp.float32), (0, 2, 1))      # (B, C, M)
    if M_pad != M:
        pad = M_pad - M
        mask_f = jnp.pad(mask_f, ((0, 0), (0, pad)))                  # mask=0 on pad rows
        ind_i = jnp.pad(ind_i, ((0, 0), (0, pad)))                    # ind=0 (gated by mask)
        tgt_t = jnp.pad(tgt_t, ((0, 0), (0, 0), (0, pad)))            # target=0 on pad rows
    # Pre-shape ind so the kernel never relayouts it per grid step.
    ind_i = ind_i[:, :, None]                                         # (B, M_pad, 1)

    # VMEM budget (tightened; clamped generation-aware).
    est = (
        2 * 4 * B * C * tk_sel            # feat tiles, double-buffered (f32)
        + 2 * B * M_pad * tk_sel          # bf16 one-hot temp
        + 3 * 2 * B * C * tk_sel          # hi/mid/lo bf16 temps
        + 2 * 4 * B * C * tk_sel          # split-residual f32 temps
        + 2 * 4 * B * C * M_pad           # accumulator scratch + einsum result temp
        + 3 * 4 * B * C * M_pad           # epilogue temps
        + 2 * 2 * 4 * B * M_pad           # mask + ind blocks (double-buffered)
        + 2 * 4 * B * C * M_pad           # target block (double-buffered)
    )
    vmem_limit = int(min(max(2 * est, 8 * 1024 * 1024),
                         max(16 * 1024 * 1024, vmem_cap // 2)))

    kernel = functools.partial(_matmul_gather_loss_kernel,
                               sigma=float(sigma), tk=tk_sel)

    out = pl.pallas_call(
        kernel,
        out_shape=jax.ShapeDtypeStruct((1, C), jnp.float32),
        grid_spec=pltpu.PrefetchScalarGridSpec(
            num_scalar_prefetch=0,
            grid=(num_k,),
            in_specs=[
                pl.BlockSpec((B, C, tk_sel), lambda k: (0, 0, k)),    # feat: tiled over HW
                pl.BlockSpec((B, M_pad), lambda k: (0, 0)),           # mask: resident
                pl.BlockSpec((B, M_pad, 1), lambda k: (0, 0, 0)),     # ind:  resident
                pl.BlockSpec((B, C, M_pad), lambda k: (0, 0, 0)),     # target: resident
            ],
            out_specs=pl.BlockSpec((1, C), lambda k: (0, 0)),
            scratch_shapes=[pltpu.VMEM((B, C, M_pad), jnp.float32)],  # pred accumulator
        ),
        compiler_params=pltpu.CompilerParams(
            dimension_semantics=("arbitrary",),    # HW is a reduction axis
            vmem_limit_bytes=vmem_limit,
        ),
    )(feat, mask_f, ind_i, tgt_t)
    return out[0]  # (C,)


# -----------------------------------------------------------------------------
# Public entry point (matches SmoothRegLoss.forward).
# -----------------------------------------------------------------------------
def smooth_reg_loss(output, mask, ind, target, sin_loss=False, *, sigma=3,
                    gather="auto", tk=None):
    """output: (B, C, H, W) NCHW; mask: (B, M); ind: (B, M); target: (B, M, C)."""
    assert sin_loss is False
    _, _, H, W = output.shape
    M = ind.shape[1]
    HW = H * W
    if gather == "auto":
        # CenterPoint regime is HW >> M: row-gather DMAs move only ~B*M*C
        # elements instead of pushing the whole map through a one-hot matmul.
        gather = "dma" if HW >= 2 * M else "matmul"
    if gather == "dma":
        return _smooth_reg_loss_dma(output, mask, ind, target, sigma=sigma)
    return _smooth_reg_loss_matmul(output, mask, ind, target, sigma=sigma, tk=tk)


def _reference(output, mask, ind, target, sigma=3):
    """Plain-JAX reference mirroring the PyTorch code."""
    B, C, H, W = output.shape
    feat = output.reshape(B, C, H * W).transpose(0, 2, 1)             # (B, HW, C)
    pred = jnp.take_along_axis(feat, ind[:, :, None].astype(jnp.int32), axis=1)  # (B, M, C)

    num = jnp.sum(mask.astype(jnp.float32))
    m = mask.astype(jnp.float32)[:, :, None] * (~jnp.isnan(target)).astype(jnp.float32)
    regr = pred * m
    gt = target * m
    abs_diff = jnp.abs(regr - gt)
    lt = (abs_diff <= 1.0 / sigma ** 2).astype(jnp.float32)
    loss = lt * 0.5 * jnp.square(abs_diff * sigma) + (abs_diff - 0.5 / sigma ** 2) * (1.0 - lt)
    return jnp.sum(loss, axis=(0, 1)) / (num + 0.0001)


if __name__ == "__main__":
    key = jax.random.PRNGKey(0)
    B, C, H, W, M = 2, 4, 16, 16, 8

    k1, k2, k3, k4 = jax.random.split(key, 4)
    output = jax.random.normal(k1, (B, C, H, W), dtype=jnp.float32)
    target = jax.random.normal(k2, (B, M, C), dtype=jnp.float32)
    ind = jax.random.randint(k3, (B, M), 0, H * W, dtype=jnp.int32)
    mask = (jax.random.uniform(k4, (B, M)) > 0.3).astype(jnp.float32)

    ref = _reference(output, mask, ind, target)

    # Primary path: scalar-prefetch + manual-DMA row gather.
    loss_dma = jax.block_until_ready(
        smooth_reg_loss(output, mask, ind, target, sin_loss=False, gather="dma"))
    assert loss_dma.shape == (C,)
    assert jnp.allclose(loss_dma, ref, atol=1e-5, rtol=1e-5), (loss_dma, ref)

    # Fallback path: one-hot MXU gather, multi-step HW reduction (tk=128 -> 2 steps).
    loss_mm = jax.block_until_ready(
        smooth_reg_loss(output, mask, ind, target, sin_loss=False,
                        gather="matmul", tk=128))
    assert jnp.allclose(loss_mm, ref, atol=1e-5, rtol=1e-5), (loss_mm, ref)

    # Auto dispatch (picks the DMA path for HW >> M).
    loss_auto = jax.block_until_ready(
        smooth_reg_loss(output, mask, ind, target, sin_loss=False))
    assert jnp.allclose(loss_auto, ref, atol=1e-5, rtol=1e-5), (loss_auto, ref)

    print("KERNEL_OK")
</pallas_src>

<mosaic_0001>
module attributes {stable_mosaic.version = 11 : i64} {
  func.func @_dma_gather_loss_kernel(%arg0: i32, %arg1: memref<2x8xi32, #tpu.memory_space<smem>>, %arg2: memref<512x4xf32, #tpu.memory_space<any>>, %arg3: memref<1x8x1xf32, #tpu.memory_space<vmem>>, %arg4: memref<1x8x4xf32, #tpu.memory_space<vmem>>, %arg5: memref<1x1x4xf32, #tpu.memory_space<vmem>>, %arg6: memref<8x4xf32, #tpu.memory_space<vmem>>, %arg7: memref<!tpu.dma_semaphore, #tpu.memory_space<semaphore_mem>>) attributes {dimension_semantics = [#tpu.dimension_semantics<parallel>], iteration_bounds = array<i64: 2>, scalar_prefetch = 1 : i64, scratch_operands = 2 : i64, tpu.core_type = #tpu.core_type<tc>, window_params = [{}, {transform_indices = @transform_1, window_bounds = array<i64: 1, 8, 1>}, {transform_indices = @transform_2, window_bounds = array<i64: 1, 8, 4>}, {transform_indices = @transform_3, window_bounds = array<i64: 1, 1, 4>}]} {
    %c0_i32 = arith.constant 0 : i32
    %c8_i32 = arith.constant 8 : i32
    %0 = arith.addi %c0_i32, %c8_i32 : i32
    %c1_i32 = arith.constant 1 : i32
    scf.for %arg8 = %c0_i32 to %0 step %c1_i32  : i32 {
      %c1_i32_19 = arith.constant 1 : i32
      %30 = arith.muli %arg8, %c1_i32_19 : i32
      %c0_i32_20 = arith.constant 0 : i32
      %31 = arith.addi %c0_i32_20, %30 : i32
      %c256_i32 = arith.constant 256 : i32
      %32 = arith.muli %arg0, %c256_i32 : i32
      %33 = arith.index_cast %arg0 : i32 to index
      %34 = arith.index_cast %31 : i32 to index
      %35 = memref.load %arg1[%33, %34] : memref<2x8xi32, #tpu.memory_space<smem>>
      %36 = arith.addi %32, %35 : i32
      %c0_i32_21 = arith.constant 0 : i32
      %37 = tpu.memref_slice %arg2[%36, %c0_i32_21] : memref<512x4xf32, #tpu.memory_space<any>> -> memref<1x4xf32, #tpu.memory_space<any>>
      %c0_i32_22 = arith.constant 0 : i32
      %38 = tpu.memref_slice %arg6[%31, %c0_i32_22] : memref<8x4xf32, #tpu.memory_space<vmem>> -> memref<1x4xf32, #tpu.memory_space<vmem>>
      tpu.enqueue_dma source(%37 : memref<1x4xf32, #tpu.memory_space<any>>) target(%38 : memref<1x4xf32, #tpu.memory_space<vmem>>) target_semaphore(%arg7 : memref<!tpu.dma_semaphore, #tpu.memory_space<semaphore_mem>>)
    }
    %c8_i32_0 = arith.constant 8 : i32
    %c0_i32_1 = arith.constant 0 : i32
    %c8_i32_2 = arith.constant 8 : i32
    %1 = arith.addi %c0_i32_1, %c8_i32_2 : i32
    %c1_i32_3 = arith.constant 1 : i32
    scf.for %arg8 = %c0_i32_1 to %1 step %c1_i32_3  : i32 {
      %c1_i32_19 = arith.constant 1 : i32
      %30 = arith.muli %arg8, %c1_i32_19 : i32
      %c0_i32_20 = arith.constant 0 : i32
      %31 = arith.addi %c0_i32_20, %30 : i32
      %c256_i32 = arith.constant 256 : i32
      %32 = arith.muli %arg0, %c256_i32 : i32
      %33 = arith.index_cast %arg0 : i32 to index
      %34 = arith.index_cast %31 : i32 to index
      %35 = memref.load %arg1[%33, %34] : memref<2x8xi32, #tpu.memory_space<smem>>
      %36 = arith.addi %32, %35 : i32
      %c0_i32_21 = arith.constant 0 : i32
      %37 = tpu.memref_slice %arg2[%36, %c0_i32_21] : memref<512x4xf32, #tpu.memory_space<any>> -> memref<1x4xf32, #tpu.memory_space<any>>
      %c0_i32_22 = arith.constant 0 : i32
      %38 = tpu.memref_slice %arg6[%31, %c0_i32_22] : memref<8x4xf32, #tpu.memory_space<vmem>> -> memref<1x4xf32, #tpu.memory_space<vmem>>
      tpu.wait_dma2 semaphore(%arg7 : memref<!tpu.dma_semaphore, #tpu.memory_space<semaphore_mem>>) src(%37 : memref<1x4xf32, #tpu.memory_space<any>>) dst(%38 : memref<1x4xf32, #tpu.memory_space<vmem>>)
    }
    %c8_i32_4 = arith.constant 8 : i32
    %c0 = arith.constant 0 : index
    %c0_5 = arith.constant 0 : index
    %2 = vector.load %arg6[%c0, %c0_5] : memref<8x4xf32, #tpu.memory_space<vmem>>, vector<8x4xf32>
    %c0_6 = arith.constant 0 : index
    %c0_7 = arith.constant 0 : index
    %c0_8 = arith.constant 0 : index
    %3 = vector.load %arg4[%c0_6, %c0_7, %c0_8] : memref<1x8x4xf32, #tpu.memory_space<vmem>>, vector<1x8x4xf32>
    %4 = vector.shape_cast %3 : vector<1x8x4xf32> to vector<8x4xf32>
    %c0_9 = arith.constant 0 : index
    %c0_10 = arith.constant 0 : index
    %c0_11 = arith.constant 0 : index
    %5 = vector.load %arg3[%c0_9, %c0_10, %c0_11] : memref<1x8x1xf32, #tpu.memory_space<vmem>>, vector<1x8x1xf32>
    %6 = vector.shape_cast %5 : vector<1x8x1xf32> to vector<8x1xf32>
    %7 = arith.cmpf one, %4, %4 : vector<8x4xf32>
    %cst = arith.constant dense<true> : vector<8x4xi1>
    %8 = arith.xori %7, %cst : vector<8x4xi1>
    %9 = arith.extui %8 : vector<8x4xi1> to vector<8x4xi32>
    %10 = arith.sitofp %9 : vector<8x4xi32> to vector<8x4xf32>
    %11 = vector.broadcast %6 : vector<8x1xf32> to vector<8x4xf32>
    %12 = arith.mulf %11, %10 : vector<8x4xf32>
    %13 = arith.mulf %2, %12 : vector<8x4xf32>
    %14 = arith.mulf %4, %12 : vector<8x4xf32>
    %15 = arith.subf %13, %14 : vector<8x4xf32>
    %16 = math.absf %15 : vector<8x4xf32>
    %cst_12 = arith.constant 0.111111112 : f32
    %17 = vector.broadcast %cst_12 : f32 to vector<8x4xf32>
    %18 = arith.cmpf ole, %16, %17 : vector<8x4xf32>
    %cst_13 = arith.constant 4.500000e+00 : f32
    %19 = vector.broadcast %cst_13 : f32 to vector<8x4xf32>
    %20 = arith.mulf %19, %16 : vector<8x4xf32>
    %21 = arith.mulf %20, %16 : vector<8x4xf32>
    %cst_14 = arith.constant 0.055555556 : f32
    %22 = vector.broadcast %cst_14 : f32 to vector<8x4xf32>
    %23 = arith.subf %16, %22 : vector<8x4xf32>
    %24 = arith.select %18, %21, %23 : vector<8x4xi1>, vector<8x4xf32>
    %cst_15 = arith.constant dense<0.000000e+00> : vector<4xf32>
    %25 = vector.multi_reduction <add>, %24, %cst_15 [0] : vector<8x4xf32> to vector<4xf32>
    %26 = vector.shape_cast %25 : vector<4xf32> to vector<1x4xf32>
    %c0_16 = arith.constant 0 : index
    %c0_17 = arith.constant 0 : index
    %c0_18 = arith.constant 0 : index
    %27 = vector.load %arg5[%c0_16, %c0_17, %c0_18] : memref<1x1x4xf32, #tpu.memory_space<vmem>>, vector<1x1x4xf32>
    %28 = vector.shape_cast %27 : vector<1x1x4xf32> to vector<1x4xf32>
    %29 = vector.shape_cast %26 : vector<1x4xf32> to vector<1x1x4xf32>
    tpu.vector_store %arg5[%c0_16, %c0_17, %c0_18], %29 {strides = array<i32>} : memref<1x1x4xf32, #tpu.memory_space<vmem>>, vector<1x1x4xf32>,
    return
  }
  func.func @transform_1(%arg0: i32, %arg1: memref<2x8xi32, #tpu.memory_space<smem>>) -> (i32, i32, i32) {
    %c0_i32 = arith.constant 0 : i32
    %c0_i32_0 = arith.constant 0 : i32
    %c0_i32_1 = arith.constant 0 : i32
    return %arg0, %c0_i32, %c0_i32_0 : i32, i32, i32
  }
  func.func @transform_2(%arg0: i32, %arg1: memref<2x8xi32, #tpu.memory_space<smem>>) -> (i32, i32, i32) {
    %c0_i32 = arith.constant 0 : i32
    %c0_i32_0 = arith.constant 0 : i32
    %c0_i32_1 = arith.constant 0 : i32
    return %arg0, %c0_i32, %c0_i32_0 : i32, i32, i32
  }
  func.func @transform_3(%arg0: i32, %arg1: memref<2x8xi32, #tpu.memory_space<smem>>) -> (i32, i32, i32) {
    %c0_i32 = arith.constant 0 : i32
    %c0_i32_0 = arith.constant 0 : i32
    %c0_i32_1 = arith.constant 0 : i32
    return %arg0, %c0_i32, %c0_i32_0 : i32, i32, i32
  }
}

</mosaic_0001>

<bundles_post_ra>
// kernel: tpu_custom_call.1
= control target key start
LH: loop header
LB: loop body
LE: loop exit
PB: predicated region body
PF: predicated region fallthrough
CT: control target
= control target key end

     0   :  { %s539_s18 = smov [#allocation5]   ;;  %s678_s0 = inlined_call_operand.vmem [shape: s32[2,8], index: 0, kind: input, shape index: {}]   ;;  %s679_s1 = inlined_call_operand.vmem [shape: f32[512,4], index: 1, kind: input, shape index: {}]   ;;  %s680_s2 = inlined_call_operand.vmem [shape: f32[2,8,1], index: 2, kind: input, shape index: {}]   ;;  %s681_s3 = inlined_call_operand.vmem [shape: f32[2,8,4], index: 3, kind: input, shape index: {}]   ;;  %s682_s4 = inlined_call_operand.hbm [shape: f32[2,1,4], index: 4, kind: output, shape index: {}]  }
   0x1   :  { %s10_s17 = sshll.u32 %s678_s0, 4  ;;  %s11_s17 = int_to_ptr.vmem [resolvable:$true] %s10_s17 }
   0x2   :  { %13 = dma.vmem_to_smem %s11_s17, 32, %s539_s18, [#allocation4] }
   0x3   :  { %507 = dma.done.wait [#allocation4], 32 }
   0x4   :  { %508 = vsyncadd [#allocation4], 4294967264 }
   0x5   :  { %16 = sfence }
   0x6   :  { %17 = vsyncpa [#allocation7], 0 }
   0x7   :  { %19 = vsyncpa [#allocation7 + $0x1], 0  ;;  %s571_s19 = smov 0   ;;  %s573_s20 = smov 0  }
   0x8   :  { %s575_s21 = smov 0   ;;  %s577_s22 = smov 0  }
   0x9 LB: > { %s592_s0 = sadd.s32 4294967295, %s529_s22   ;;  %s370_s23 = sadd.s32 4294967294, %s529_s22   ;;  %s529_s22 = sphi %s577_s22, %s688_s22   ;;  %s525_s21 = sphi %s575_s21, %s687_s21   ;;  %s521_s20 = sphi %s573_s20, %s686_s20   ;;  %s517_s19 = sphi %s571_s19, %s685_s19  }
   0xa   : > { %s596_s24 = sadd.s32 1, %s529_s22   ;;  %s84_s25 = sadd.s32 1, %s525_s21 }
   0xb   : > { %s81_s26 = ssub.s32 %s529_s22, %s596_s24  ;;  %p94_p0 = scmp.ne.s32.totalorder %s525_s21, %s521_s20 }
   0xc   : > { %p82_p1 = scmp.eq.s32.totalorder %s81_s26, 0  ;;  %p95_p2 = scmp.eq.s32.totalorder %s592_s0, 1 }
   0xd   : > { %p100_p3 = scmp.ne.s32.totalorder %s521_s20, %s517_s19  ;;  %p101_p4 = scmp.eq.s32.totalorder %s370_s23, 1 }
   0xe   : > { %s607_s27 = scalar_select %p82_p1, %s525_s21, %s84_s25  }
   0xf   : > { %p609_p5 = por %p95_p2, %p94_p0  ;;  %p613_p6 = por %p101_p4, %p100_p3 }
  0x10   : > { %p373_p7 = scmp.ge.s32.totalorder %s529_s22, 1  ;;  %p133_p8 = scmp.lt.s32.totalorder %s529_s22, 3 }
  0x12   : > { %p134_p9 = pnand %p373_p7, %p133_p8 }
  0x13   : > { %s155_s30 = sand.u32 (!%p134_p9), 1, %s521_s20   ;;  %p157_p10 = scmp.lt.s32.totalorder (!%p134_p9), %s592_s0, 1 }
  0x14   : > { %137 = sbr.rel (%p134_p9) target bundleno = 200 (0xc8), region = 28  ;;  %s634_s13 = scalar_lea.vmem (!%p134_p9), [#allocation6], %s155_s30 }
  0x15   : > { %s531_s14 = smov (!%p134_p9), 0  }
  0x19   : > { %s158_s5 = scalar_select %p157_p10, %s592_s0, 1 }
  0x1b   : > { %s374_s6 = sshll.u32 %s158_s5, 3 }
  0x1c   : > { %s625_s9 = scalar_lea.vmem %s680_s2, %s374_s6  ;;  %s630_s12 = scalar_lea.vmem %s681_s3, %s374_s6 }
  0x1d LB: >> { %s172_s15 = sshra.s32 %s533_s14, 7  ;;  %s177_s16 = sand.u32 127, %s533_s14  ;;  %s533_s14 = sphi %s531_s14, %s170_s14  }
  0x1e   : >> { %s174_s17 = sadd.s32 %s592_s0, %s172_s15  ;;  %s376_s26 = sshll.u32 %s592_s0, 8 }
  0x1f   : >> { %s377_s18 = sshll.u32 %s174_s17, 7  ;;  %s182_s10 = scalar_lea.vmem [#allocation2], %s533_s14 }
  0x20   : >> { %s178_s23 = sadd.s32 %s377_s18, %s177_s16 }
  0x21   : >> { %s179_s25 = sld [smem:[#allocation5 + %s178_s23]] }
  0x27   : >> { %s180_s5 = sadd.s32 %s376_s26, %s179_s25 }
  0x28   : >> { %s181_s8 = scalar_lea.vmem %s679_s1, %s180_s5 }
  0x29   : >> { %v197_v0 = vld [vmem:[%s181_s8] sm:$0x1] }
  0x2a   : >> { %198 = vst [vmem:[%s182_s10] sm:$0x1] %v197_v0 }
  0x2b   : >> { %216 = vsyncadd [#allocation3], 16  ;;  %s170_s14 = sadd.s32 1, %s533_s14  }
  0x2c   : >> { %p167_p11 = scmp.ge.s32.totalorder %s170_s14, 8  }
  0x2d   : > { %s535_s11 = smov (%p167_p11), 0  }
  0x2e   : > { %169 = sbr.rel (!%p167_p11) target bundleno = 29 (0x1d), region = 116 }
  0x33 LB: >> { %509 = dma.done.wait [#allocation3], 16  ;;  %s537_s11 = sphi %s535_s11, %s222_s11  }
  0x34   : >> { %510 = vsyncadd [#allocation3], 4294967280  ;;  %s222_s11 = sadd.s32 1, %s537_s11  }
  0x35   : >> { %p219_p12 = scmp.ge.s32.totalorder %s222_s11, 8  }
  0x36   : > { %v236_v1 = vld [vmem:[%s625_s9] sm:$0xff] (%p219_p12)  ;;  %v540_v2 = vmov (%p219_p12), 0   ;;  %vm541_vm1 = vmmov (%p219_p12), 1   ;;  %v542_v4 = vmov (%p219_p12), 0.0   ;;  %vm256_vm3 = vcmask (%p219_p12), 31744   ;;  %s275_s14 = scalar_lea.hbm (%p219_p12), %s682_s4, %s592_s0  ;;  %s277_s15 = sshll.u32 (%p219_p12), %s634_s13, 4  ;;  %s278_s15 = int_to_ptr.vmem [resolvable:$true] %s277_s15 }
  0x37   : > { %221 = sbr.rel (!%p219_p12) target bundleno = 51 (0x33), region = 127  ;;  %442 = vset.pattern.permute.xlu0 (%p219_p12), %v540_v2  ;;  %v235_v3 = vld [vmem:[%s630_s12] sm:$0xff] (%p219_p12)  ;;  %s279_s16 = sshll.u32 (%p219_p12), %s275_s14, 4  ;;  %vm264_vm5 = vcmask (%p219_p12), 24576   ;;  %s280_s16 = int_to_ptr.hbm [resolvable:$true] %s279_s16 }
  0x38   : > { %243 = vperm.xlu0 (%p219_p12), %442, %v236_v1   ;;  %vm237_vm0 = vcmp.ne.f32.partialorder (%p219_p12), %v235_v3, %v235_v3  ;;  %v234_v7 = vld [vmem:[#allocation2] sm:$0xff] (%p219_p12)  ;;  %s267_s17 = scalar_lea.sflag (%p219_p12), [#allocation7], %s155_s30  ;;  %s469_s18 = sshra.s32 (%p219_p12), %s280_s16, 4  ;;  %s470_s18 = int_to_ptr.hbm [resolvable:$true] %s469_s18 }
  0x39   : > { %vm238_vm2 = vmxor (%p219_p12), %vm237_vm0, %vm541_vm1  ;;  %s471_s23 = scalar_lea.hbm (%p219_p12), %s470_s18, 1  ;;  %s475_s26 = scalar_lea.hbm (%p219_p12), %s682_s4, 2 }
  0x3a   : > { %v378_v5 = vsel (%p219_p12), %vm238_vm2, 1.0, %v542_v4  ;;  %p472_p13 = scmp.ne.s32.totalorder (%p219_p12), %s470_s18, %s471_s23  ;;  %p476_p2 = scmp.lt.s32.totalorder (%p219_p12), %s470_s18, %s682_s4 }
  0x3b   : > { %p477_p3 = scmp.lt.s32.totalorder (%p219_p12), %s475_s26, %s471_s23 }
  0x3c   : > { %p473_p0 = pnand %p472_p13, %p609_p5 }
  0x3d   : > { %p478_p4 = por %p477_p3, %p476_p2 }
  0x3e   : > { %p474_p1 = pneg %p473_p0 }
  0x40   : > { %p479_p7 = pnand %p478_p4, %p474_p1 }
  0xaa   : > { %v244_v6 = vpop.permute.xlu0 %243 }
  0xab   : > { %v246_v8 = vmul.f32 %v378_v5, %v244_v6 }
  0xad   : > { %v247_v9 = vmul.f32 %v246_v8, %v234_v7  ;;  %v248_v10 = vmul.f32 %v246_v8, %v235_v3 }
  0xaf   : > { %v249_v11 = vsub.f32 %v247_v9, %v248_v10 }
  0xb1   : > { %v250_v12 = vand.u32 2147483647, %v249_v11 }
  0xb3   : > { %v252_v13 = vmul.f32 4.5, %v250_v12  ;;  %v379_v15 = vadd.f32 -0.055555556, %v250_v12  ;;  %vm251_vm4 = vcmp.le.f32.partialorder %v250_v12, 0.11111111 }
  0xb5   : > { %v253_v14 = vmul.f32 %v252_v13, %v250_v12 }
  0xb7   : > { %v255_v16 = vsel %vm251_vm4, %v253_v14, %v379_v15 }
  0xb8   : > { %v257_v17 = vsel %vm256_vm3, %v255_v16, 0.0 }
  0xb9   : > { %v258_v18 = vrot.slane %v257_v17, 4 }
  0xbb   : > { %v259_v19 = vadd.f32 %v258_v18, %v257_v17 }
  0xbd   : > { %v260_v20 = vrot.slane %v259_v19, 2 }
  0xbf   : > { %v261_v21 = vadd.f32 %v260_v20, %v259_v19 }
  0xc1   : > { %v262_v22 = vrot.slane %v261_v21, 1 }
  0xc3   : > { %v263_v23 = vadd.f32 %v262_v22, %v261_v21 }
  0xc5   : > { %265 = vst.msk [vmem:[%s634_s13] sm:$0x1] %vm264_vm5, %v263_v23 }
  0xc6   : > { %482 = shalt.err (!%p479_p7)
}
  0xc7   : > { %383 = dma.vmem_to_hbm [thread:$0]  (%p609_p5), %s278_s15, 16, %s280_s16, %s267_s17  }
  0xc8 PF: > { %p389_p8 = scmp.ge.s32.totalorder %s529_s22, 2  ;;  %s291_s30 = sand.u32 1, %s517_s19  }
  0xc9   : > { %s292_s13 = scalar_lea.sflag [#allocation7], %s291_s30 }
  0xca   : > { %p386_p9 = pnand %p389_p8, %p613_p6 }
  0xcc   : > { %p387_p10 = pneg %p386_p9 }
  0xce   : > { %512 = dma.done.wait (%p387_p10), %s292_s13, 16  }
  0xcf   : > { %514 = vsyncadd (%p387_p10), %s292_s13, 4294967280  ;;  %p22_p11 = scmp.ge.s32.totalorder %s596_s24, 4   ;;  %s685_s19 = smov %s521_s20 }
  0xd0   : > { %s686_s20 = smov %s525_s21  ;;  %s687_s21 = smov %s607_s27 }
  0xd1   : > { %s688_s22 = smov %s596_s24  ;;  %24 = sbr.rel (!%p22_p11) target bundleno = 9 (0x9), region = 138 }
  0xd6   :  { %297 = vsyncpa [#allocation7], 1 }
  0xd7   :  { %299 = vsyncpa [#allocation7 + $0x1], 1 }
  0xd8   :  { %300 = vsyncmov [#allocation3] }
  0xdb   :  { %s301_s22 = vpop.sfrf %300 }
  0xdc   :  { %p382_p5 = scmp.ne.s32.totalorder %s301_s22, 0 }
  0xde   :  { %305 = shalt.err (%p382_p5)  }

</bundles_post_ra>
